<compile_context>
chip_gen: v6e
topology: v6e:2x2x1
jax: 0.10.0
libtpu: 0.0.40
codegen_flags: <defaults>
</compile_context>

<pallas_src>
import functools

import jax
import jax.numpy as jnp
from jax.experimental import pallas as pl
from jax.experimental.pallas import tpu as pltpu


def _margin_loss_kernel(t_ref, p_ref, out_ref, acc_ref, *,
                        m_pos, m_neg, lambda_, inv_batch):
    pid = pl.program_id(0)

    @pl.when(pid == 0)
    def _init():
        acc_ref[...] = jnp.zeros_like(acc_ref)

    t = t_ref[...].astype(jnp.float32)                    # (tile_rows, W)
    p = p_ref[...].astype(jnp.float32)

    present = t * jnp.square(jnp.maximum(m_pos - p, 0.0))
    absent = (1.0 - t) * jnp.square(jnp.maximum(p - m_neg, 0.0))
    losses = present + lambda_ * absent                   # (tile_rows, W)

    # Fold sublane groups into the (8, W) accumulator with plain vector adds.
    # The reshape groups whole (8, 128) tiles, so it is a free view; the
    # cross-lane/sublane reduce happens exactly once, in the finalize branch.
    tile_rows, lane_width = losses.shape
    acc_ref[...] += losses.reshape(tile_rows // 8, 8, lane_width).sum(axis=0)

    @pl.when(pid == pl.num_programs(0) - 1)
    def _finalize():
        # 1/B is a trace-time constant -> no in-kernel divide.
        out_ref[0, 0] = jnp.sum(acc_ref[...]) * jnp.float32(inv_batch)


def margin_loss(target, input, *, m_pos=0.9, m_neg=0.1, lambda_=0.5,
                lane_width=1024, vmem_budget_bytes=12 << 20, tile_rows=None):
    """Drop-in for MarginLoss.forward.

    target: (B, C) one-hot (or soft) target.
    input:  (B, C) digit probabilities, or a tuple whose 2nd element is the
            probabilities (as in the PyTorch capsule-net module).
    """
    if isinstance(input, tuple):
        _, probs = input
    else:
        probs = input
    target = jnp.asarray(target)
    probs = jnp.asarray(probs)
    if target.shape != probs.shape:
        raise ValueError(f"target {target.shape} and probs {probs.shape} must match")
    if lane_width % 128 != 0:
        raise ValueError("lane_width must be a multiple of 128")

    B = probs.shape[0]
    n = int(probs.size)

    # Row tile from a v7x-safe VMEM budget.  Footprint counts BOTH
    # double-buffered input streams (target + probs).
    if tile_rows is None:
        bytes_per_row_dbuf = 2 * lane_width * (target.dtype.itemsize +
                                               probs.dtype.itemsize)
        tile_rows = max(16, (vmem_budget_bytes // bytes_per_row_dbuf) // 16 * 16)
    elif tile_rows % 16 != 0:
        # multiple of 16 keeps bf16 sublane packing legal for multi-step grids
        raise ValueError("tile_rows must be a multiple of 16")

    rows_data = pl.cdiv(n, lane_width)
    if rows_data <= tile_rows:
        rows = max(8, ((rows_data + 7) // 8) * 8)   # single step, full-dims block
        tile_rows = rows
    else:
        rows = pl.cdiv(rows_data, tile_rows) * tile_rows
    total = rows * lane_width

    def repack(x):
        # Lane-dense view: flatten (free for contiguous arrays) + zero pad the
        # ragged tail.  Zero-padded (t=0, p=0) elements contribute exactly 0.
        flat = x.reshape(-1)
        if total != n:
            flat = jnp.pad(flat, (0, total - n))
        return flat.reshape(rows, lane_width)

    t2 = repack(target)
    p2 = repack(probs)
    grid = (rows // tile_rows,)

    kernel = functools.partial(
        _margin_loss_kernel,
        m_pos=float(m_pos), m_neg=float(m_neg), lambda_=float(lambda_),
        inv_batch=1.0 / B)

    out = pl.pallas_call(
        kernel,
        out_shape=jax.ShapeDtypeStruct((1, 1), jnp.float32),
        grid_spec=pltpu.PrefetchScalarGridSpec(
            num_scalar_prefetch=0,
            grid=grid,
            in_specs=[
                pl.BlockSpec((tile_rows, lane_width), lambda i: (i, 0)),  # target
                pl.BlockSpec((tile_rows, lane_width), lambda i: (i, 0)),  # probs
            ],
            out_specs=pl.BlockSpec((1, 1), lambda i: (0, 0),
                                   memory_space=pltpu.SMEM),
            scratch_shapes=[pltpu.VMEM((8, lane_width), jnp.float32)],
        ),
        compiler_params=pltpu.CompilerParams(
            # single grid axis carries the accumulator -> reduction axis.
            dimension_semantics=("arbitrary",),
            # explicit scoped-VMEM limit: covers the double-buffered tiles on
            # v5e (16 MiB default) and stays well under v7x's 64 MiB physical.
            vmem_limit_bytes=32 << 20,
        ),
    )(t2, p2)
    return out[0, 0]


def margin_loss_ref(target, digit_probs, m_pos=0.9, m_neg=0.1, lambda_=0.5):
    t = target.astype(jnp.float32)
    p = digit_probs.astype(jnp.float32)
    present = t * jnp.maximum(m_pos - p, 0.0) ** 2
    absent = (1.0 - t) * jnp.maximum(p - m_neg, 0.0) ** 2
    losses = present + lambda_ * absent
    return jnp.mean(jnp.sum(losses, axis=1))


if __name__ == "__main__":
    key = jax.random.PRNGKey(0)
    k1, k2, k3, k4 = jax.random.split(key, 4)

    # Case 1: canonical capsule-net shapes (batch=8, 10 digit classes), f32
    # one-hot target, tuple input form (reconstruction, digit_probs).
    B, C = 8, 10
    labels = jax.random.randint(k1, (B,), 0, C)
    target = jax.nn.one_hot(labels, C, dtype=jnp.float32)
    probs = jax.random.uniform(k2, (B, C), dtype=jnp.float32)

    loss = jax.block_until_ready(margin_loss(target, (None, probs)))
    ref = margin_loss_ref(target, probs)
    assert jnp.allclose(loss, ref, rtol=1e-5, atol=1e-6), (loss, ref)

    # Case 2: multi-step grid + zero-padded ragged tail + bf16 probs + soft
    # (non-one-hot) target, exercising the dense-target path exactly.
    B2, C2 = 300, 10
    target2 = jax.nn.softmax(jax.random.normal(k3, (B2, C2)), axis=-1)
    probs2 = jax.random.uniform(k4, (B2, C2)).astype(jnp.bfloat16)

    loss2 = jax.block_until_ready(
        margin_loss(target2, probs2, lane_width=128, tile_rows=16))
    ref2 = margin_loss_ref(target2, probs2)
    assert jnp.allclose(loss2, ref2, rtol=1e-5, atol=1e-5), (loss2, ref2)

    print("KERNEL_OK")
</pallas_src>

<mosaic_0001>
module attributes {stable_mosaic.version = 11 : i64} {
  func.func @_margin_loss_kernel(%arg0: i32, %arg1: memref<8x1024xf32, #tpu.memory_space<vmem>>, %arg2: memref<8x1024xf32, #tpu.memory_space<vmem>>, %arg3: memref<1x1xf32, #tpu.memory_space<smem>>, %arg4: memref<8x1024xf32, #tpu.memory_space<vmem>>) attributes {dimension_semantics = [#tpu.dimension_semantics<arbitrary>], iteration_bounds = array<i64: 1>, scalar_prefetch = 0 : i64, scratch_operands = 1 : i64, tpu.core_type = #tpu.core_type<tc>, window_params = [{transform_indices = @transform_0, window_bounds = array<i64: 8, 1024>}, {transform_indices = @transform_1, window_bounds = array<i64: 8, 1024>}, {transform_indices = @transform_2, window_bounds = array<i64: 1, 1>}]} {
    %c0_i32 = arith.constant 0 : i32
    %0 = arith.cmpi eq, %arg0, %c0_i32 : i32
    %1 = arith.extui %0 : i1 to i32
    %c0_i32_0 = arith.constant 0 : i32
    %2 = arith.cmpi ne, %1, %c0_i32_0 : i32
    scf.if %2 {
      %cst_16 = arith.constant 0.000000e+00 : f32
      %30 = vector.broadcast %cst_16 : f32 to vector<8x1024xf32>
      %c0_17 = arith.constant 0 : index
      %c0_18 = arith.constant 0 : index
      %31 = vector.load %arg4[%c0_17, %c0_18] : memref<8x1024xf32, #tpu.memory_space<vmem>>, vector<8x1024xf32>
      tpu.vector_store %arg4[%c0_17, %c0_18], %30 {strides = array<i32>} : memref<8x1024xf32, #tpu.memory_space<vmem>>, vector<8x1024xf32>,
    } else {
    }
    %c0 = arith.constant 0 : index
    %c0_1 = arith.constant 0 : index
    %3 = vector.load %arg1[%c0, %c0_1] : memref<8x1024xf32, #tpu.memory_space<vmem>>, vector<8x1024xf32>
    %c0_2 = arith.constant 0 : index
    %c0_3 = arith.constant 0 : index
    %4 = vector.load %arg2[%c0_2, %c0_3] : memref<8x1024xf32, #tpu.memory_space<vmem>>, vector<8x1024xf32>
    %cst = arith.constant 0.899999976 : f32
    %5 = vector.broadcast %cst : f32 to vector<8x1024xf32>
    %6 = arith.subf %5, %4 : vector<8x1024xf32>
    %cst_4 = arith.constant 0.000000e+00 : f32
    %7 = vector.broadcast %cst_4 : f32 to vector<8x1024xf32>
    %8 = arith.maximumf %6, %7 : vector<8x1024xf32>
    %9 = arith.mulf %8, %8 : vector<8x1024xf32>
    %10 = arith.mulf %3, %9 : vector<8x1024xf32>
    %cst_5 = arith.constant 1.000000e+00 : f32
    %11 = vector.broadcast %cst_5 : f32 to vector<8x1024xf32>
    %12 = arith.subf %11, %3 : vector<8x1024xf32>
    %cst_6 = arith.constant 1.000000e-01 : f32
    %13 = vector.broadcast %cst_6 : f32 to vector<8x1024xf32>
    %14 = arith.subf %4, %13 : vector<8x1024xf32>
    %cst_7 = arith.constant 0.000000e+00 : f32
    %15 = vector.broadcast %cst_7 : f32 to vector<8x1024xf32>
    %16 = arith.maximumf %14, %15 : vector<8x1024xf32>
    %17 = arith.mulf %16, %16 : vector<8x1024xf32>
    %18 = arith.mulf %12, %17 : vector<8x1024xf32>
    %cst_8 = arith.constant 5.000000e-01 : f32
    %19 = vector.broadcast %cst_8 : f32 to vector<8x1024xf32>
    %20 = arith.mulf %19, %18 : vector<8x1024xf32>
    %21 = arith.addf %10, %20 : vector<8x1024xf32>
    %c0_9 = arith.constant 0 : index
    %c0_10 = arith.constant 0 : index
    %22 = vector.load %arg4[%c0_9, %c0_10] : memref<8x1024xf32, #tpu.memory_space<vmem>>, vector<8x1024xf32>
    %23 = vector.shape_cast %21 : vector<8x1024xf32> to vector<1x8x1024xf32>
    %cst_11 = arith.constant dense<0.000000e+00> : vector<8x1024xf32>
    %24 = vector.multi_reduction <add>, %23, %cst_11 [0] : vector<1x8x1024xf32> to vector<8x1024xf32>
    %25 = arith.addf %22, %24 : vector<8x1024xf32>
    %c0_12 = arith.constant 0 : index
    %c0_13 = arith.constant 0 : index
    %26 = vector.load %arg4[%c0_12, %c0_13] : memref<8x1024xf32, #tpu.memory_space<vmem>>, vector<8x1024xf32>
    tpu.vector_store %arg4[%c0_12, %c0_13], %25 {strides = array<i32>} : memref<8x1024xf32, #tpu.memory_space<vmem>>, vector<8x1024xf32>,
    %c0_i32_14 = arith.constant 0 : i32
    %27 = arith.cmpi eq, %arg0, %c0_i32_14 : i32
    %28 = arith.extui %27 : i1 to i32
    %c0_i32_15 = arith.constant 0 : i32
    %29 = arith.cmpi ne, %28, %c0_i32_15 : i32
    scf.if %29 {
      %c0_16 = arith.constant 0 : index
      %c0_17 = arith.constant 0 : index
      %30 = vector.load %arg4[%c0_16, %c0_17] : memref<8x1024xf32, #tpu.memory_space<vmem>>, vector<8x1024xf32>
      %31 = vector.shape_cast %30 : vector<8x1024xf32> to vector<1x8x1024xf32>
      %cst_18 = arith.constant dense<0.000000e+00> : vector<1xf32>
      %32 = vector.multi_reduction <add>, %31, %cst_18 [1, 2] : vector<1x8x1024xf32> to vector<1xf32>
      %33 = vector.shape_cast %32 : vector<1xf32> to vector<1x1x1xf32>
      %34 = vector.extract %33[0, 0, 0] : f32 from vector<1x1x1xf32>
      %cst_19 = arith.constant 1.250000e-01 : f32
      %35 = arith.mulf %34, %cst_19 : f32
      %c0_20 = arith.constant 0 : index
      %c0_21 = arith.constant 0 : index
      %36 = memref.load %arg3[%c0_20, %c0_21] : memref<1x1xf32, #tpu.memory_space<smem>>
      memref.store %35, %arg3[%c0_20, %c0_21] : memref<1x1xf32, #tpu.memory_space<smem>>
    } else {
    }
    return
  }
  func.func @transform_0(%arg0: i32) -> (i32, i32) {
    %c0_i32 = arith.constant 0 : i32
    %c0_i32_0 = arith.constant 0 : i32
    return %arg0, %c0_i32 : i32, i32
  }
  func.func @transform_1(%arg0: i32) -> (i32, i32) {
    %c0_i32 = arith.constant 0 : i32
    %c0_i32_0 = arith.constant 0 : i32
    return %arg0, %c0_i32 : i32, i32
  }
  func.func @transform_2(%arg0: i32) -> (i32, i32) {
    %c0_i32 = arith.constant 0 : i32
    %c0_i32_0 = arith.constant 0 : i32
    %c0_i32_1 = arith.constant 0 : i32
    return %c0_i32, %c0_i32_0 : i32, i32
  }
}

</mosaic_0001>

<bundles_post_ra>
// kernel: tpu_custom_call.1
= control target key start
LH: loop header
LB: loop body
LE: loop exit
PB: predicated region body
PF: predicated region fallthrough
CT: control target
= control target key end

     0   :  { %7 = vsyncpa [#allocation4], 0  ;;  %s355_s0 = inlined_call_operand.hbm [shape: f32[8,1024], index: 0, kind: input, shape index: {}]   ;;  %s356_s1 = inlined_call_operand.hbm [shape: f32[8,1024], index: 1, kind: input, shape index: {}]   ;;  %s357_s2 = inlined_call_operand.hbm [shape: f32[1,1], index: 2, kind: output, shape index: {}]  }
   0x1   :  { %8 = vsyncpa [#allocation7], 0 }
   0x2   :  { %9 = vsyncpa [#allocation5], 0  ;;  %s296_s9 = smov [#allocation3]   ;;  %s297_s11 = smov [#allocation6]  }
   0x3   :  { %s16_s10 = sshll.u32 %s296_s9, 4  ;;  %s26_s12 = sshll.u32 %s297_s11, 4  ;;  %s17_s10 = int_to_ptr.vmem [resolvable:$true] %s16_s10  ;;  %s27_s12 = int_to_ptr.vmem [resolvable:$true] %s26_s12 }
   0x4   :  { %s250_s13 = scalar_lea.vmem %s17_s10, 1024  ;;  %p255_p1 = scmp.lt.s32.totalorder %s17_s10, %s17_s10 }
   0x5   :  { %p251_p0 = scmp.ne.s32.totalorder %s17_s10, %s250_s13  ;;  %p256_p2 = scmp.lt.s32.totalorder %s250_s13, %s250_s13 }
   0x7   :  { %p257_p3 = por %p256_p2, %p255_p1 }
   0x9   :  { %p258_p4 = pnand %p257_p3, %p251_p0 }
   0xb   :  { %261 = shalt.err (!%p258_p4)
}
   0xc   :  { %19 = dma.hbm_to_vmem [thread:$0]  %s355_s0, 1024, %s17_s10, [#allocation4]  }
   0xd   :  { %s270_s16 = scalar_lea.vmem %s27_s12, 1024  ;;  %p275_p6 = scmp.lt.s32.totalorder %s27_s12, %s27_s12 }
   0xe   :  { %p271_p5 = scmp.ne.s32.totalorder %s27_s12, %s270_s16  ;;  %p276_p7 = scmp.lt.s32.totalorder %s270_s16, %s270_s16 }
  0x10   :  { %p277_p8 = por %p276_p7, %p275_p6 }
  0x12   :  { %p278_p9 = pnand %p277_p8, %p271_p5 }
  0x14   :  { %281 = shalt.err (!%p278_p9)
}
  0x15   :  { %29 = dma.hbm_to_vmem [thread:$0]  %s356_s1, 1024, %s27_s12, [#allocation7]  }
  0x16   :  { %290 = dma.done.wait [#allocation4], 1024  }
  0x17   :  { %291 = vsyncadd [#allocation4], 4294966272 }
  0x18   :  { %292 = dma.done.wait [#allocation7], 1024  }
  0x19   :  { %293 = vsyncadd [#allocation7], 4294966272  ;;  %v56_v0 = vld [vmem:[#allocation6] sm:$0xff]  ;;  %v57_v2 = vld [vmem:[#allocation6 + $0x8] sm:$0xff]  ;;  %s298_s19 = smov [#allocation8]  }
  0x1a   :  { %v320_v1 = vld [vmem:[#allocation3] sm:$0xff]  ;;  %v64_v3 = vsub.f32 0.9, %v56_v0  ;;  %v322_v4 = vld [vmem:[#allocation3 + $0x8] sm:$0xff]  ;;  %v324_v5 = vld [vmem:[#allocation3 + $0x10] sm:$0xff] }
  0x1b   :  { %v326_v6 = vld [vmem:[#allocation3 + $0x18] sm:$0xff]  ;;  %v58_v7 = vld [vmem:[#allocation6 + $0x10] sm:$0xff]  ;;  %v60_v9 = vld [vmem:[#allocation6 + $0x20] sm:$0xff]  ;;  %v65_v10 = vsub.f32 0.9, %v57_v2  ;;  %v96_v30 = vsub.f32 1.0, %v320_v1 }
  0x1c   :  { %v59_v8 = vld [vmem:[#allocation6 + $0x18] sm:$0xff]  ;;  %v328_v11 = vld [vmem:[#allocation3 + $0x20] sm:$0xff]  ;;  %v330_v12 = vld [vmem:[#allocation3 + $0x28] sm:$0xff]  ;;  %v66_v15 = vsub.f32 0.9, %v58_v7  ;;  %v72_v17 = vmax.f32 %v64_v3, 0.0 }
  0x1d   :  { %v332_v13 = vld [vmem:[#allocation3 + $0x30] sm:$0xff]  ;;  %v61_v14 = vld [vmem:[#allocation6 + $0x28] sm:$0xff]  ;;  %v67_v16 = vsub.f32 0.9, %v59_v8  ;;  %v63_v19 = vld [vmem:[#allocation6 + $0x38] sm:$0xff]  ;;  %v73_v24 = vmax.f32 %v65_v10, 0.0 }
  0x1e   :  { %v62_v18 = vld [vmem:[#allocation6 + $0x30] sm:$0xff]  ;;  %v68_v20 = vsub.f32 0.9, %v60_v9  ;;  %v69_v21 = vsub.f32 0.9, %v61_v14  ;;  %v74_v25 = vmax.f32 %v66_v15, 0.0  ;;  %v80_v31 = vmul.f32 %v72_v17, %v72_v17 }
  0x1f   :  { %v70_v22 = vsub.f32 0.9, %v62_v18  ;;  %v71_v23 = vsub.f32 0.9, %v63_v19  ;;  %v334_v26 = vld [vmem:[#allocation3 + $0x38] sm:$0xff]  ;;  %v75_v27 = vmax.f32 %v67_v16, 0.0  ;;  %v81_v35 = vmul.f32 %v73_v24, %v73_v24 }
  0x20   :  { %v76_v28 = vmax.f32 %v68_v20, 0.0  ;;  %v77_v29 = vmax.f32 %v69_v21, 0.0  ;;  %v97_v32 = vsub.f32 1.0, %v322_v4  ;;  %v98_v33 = vsub.f32 1.0, %v324_v5 }
  0x21   :  { %v99_v34 = vsub.f32 1.0, %v326_v6  ;;  %v100_v36 = vsub.f32 1.0, %v328_v11  ;;  %v101_v37 = vsub.f32 1.0, %v330_v12  ;;  %v102_v38 = vsub.f32 1.0, %v332_v13 }
  0x22   :  { %v78_v39 = vmax.f32 %v70_v22, 0.0  ;;  %v79_v40 = vmax.f32 %v71_v23, 0.0  ;;  %v82_v41 = vmul.f32 %v74_v25, %v74_v25  ;;  %v103_v42 = vsub.f32 1.0, %v334_v26 }
  0x23   :  { %v83_v43 = vmul.f32 %v75_v27, %v75_v27  ;;  %v84_v44 = vmul.f32 %v76_v28, %v76_v28  ;;  %v85_v45 = vmul.f32 %v77_v29, %v77_v29  ;;  %v229_v46 = vadd.f32 -0.1, %v56_v0 }
  0x24   :  { %v88_v47 = vmul.f32 %v80_v31, %v320_v1  ;;  %v230_v48 = vadd.f32 -0.1, %v57_v2  ;;  %v231_v49 = vadd.f32 -0.1, %v58_v7  ;;  %v232_v50 = vadd.f32 -0.1, %v59_v8 }
  0x25   :  { %v89_v51 = vmul.f32 %v81_v35, %v322_v4  ;;  %v233_v52 = vadd.f32 -0.1, %v60_v9  ;;  %v234_v53 = vadd.f32 -0.1, %v61_v14  ;;  %v235_v54 = vadd.f32 -0.1, %v62_v18 }
  0x26   :  { %v236_v55 = vadd.f32 -0.1, %v63_v19  ;;  %v112_v56 = vmax.f32 %v229_v46, 0.0  ;;  %v113_v57 = vmax.f32 %v230_v48, 0.0  ;;  %v114_v58 = vmax.f32 %v231_v49, 0.0 }
  0x27   :  { %v115_v59 = vmax.f32 %v232_v50, 0.0  ;;  %v116_v60 = vmax.f32 %v233_v52, 0.0  ;;  %v117_v61 = vmax.f32 %v234_v53, 0.0  ;;  %v118_v62 = vmax.f32 %v235_v54, 0.0 }
  0x28   :  { %v119_v63 = vmax.f32 %v236_v55, 0.0  ;;  %v120_v0 = vmul.f32 %v112_v56, %v112_v56  ;;  %v121_v3 = vmul.f32 %v113_v57, %v113_v57  ;;  %v122_v1 = vmul.f32 %v114_v58, %v114_v58 }
  0x29   :  { %v123_v2 = vmul.f32 %v115_v59, %v115_v59  ;;  %v124_v7 = vmul.f32 %v116_v60, %v116_v60  ;;  %v125_v8 = vmul.f32 %v117_v61, %v117_v61  ;;  %v126_v10 = vmul.f32 %v118_v62, %v118_v62 }
  0x2a   :  { %v90_v4 = vmul.f32 %v82_v41, %v324_v5  ;;  %v128_v9 = vmul.f32 %v120_v0, %v96_v30  ;;  %v129_v14 = vmul.f32 %v121_v3, %v97_v32  ;;  %v130_v15 = vmul.f32 %v122_v1, %v98_v33 }
  0x2b   :  { %v91_v16 = vmul.f32 %v83_v43, %v326_v6  ;;  %v127_v17 = vmul.f32 %v119_v63, %v119_v63  ;;  %v131_v18 = vmul.f32 %v123_v2, %v99_v34  ;;  %v132_v19 = vmul.f32 %v124_v7, %v100_v36 }
  0x2c   :  { %v133_v20 = vmul.f32 %v125_v8, %v101_v37  ;;  %v136_v21 = vmul.f32 0.5, %v128_v9  ;;  %v137_v22 = vmul.f32 0.5, %v129_v14  ;;  %v138_v23 = vmul.f32 0.5, %v130_v15 }
  0x2d   :  { %v86_v24 = vmul.f32 %v78_v39, %v78_v39  ;;  %v92_v25 = vmul.f32 %v84_v44, %v328_v11  ;;  %v134_v27 = vmul.f32 %v126_v10, %v102_v38  ;;  %v139_v28 = vmul.f32 0.5, %v131_v18 }
  0x2e   :  { %v140_v29 = vmul.f32 0.5, %v132_v19  ;;  %v144_v31 = vadd.f32 %v136_v21, %v88_v47  ;;  %v145_v5 = vadd.f32 %v137_v22, %v89_v51  ;;  %v146_v30 = vadd.f32 %v138_v23, %v90_v4 }
  0x2f   :  { %v87_v32 = vmul.f32 %v79_v40, %v79_v40  ;;  %v93_v33 = vmul.f32 %v85_v45, %v330_v12  ;;  %v135_v6 = vmul.f32 %v127_v17, %v103_v42  ;;  %v141_v35 = vmul.f32 0.5, %v133_v20 }
  0x30   :  { %v147_v34 = vadd.f32 %v139_v28, %v91_v16  ;;  %v195_v36 = vadd.f32 %v145_v5, %v144_v31  ;;  %v94_v37 = vmul.f32 %v86_v24, %v332_v13  ;;  %v142_v41 = vmul.f32 0.5, %v134_v27 }
  0x31   :  { %v148_v43 = vadd.f32 %v140_v29, %v92_v25  ;;  %v95_v11 = vmul.f32 %v87_v32, %v334_v26  ;;  %v143_v38 = vmul.f32 0.5, %v135_v6  ;;  %v149_v44 = vadd.f32 %v141_v35, %v93_v33 }
  0x32   :  { %v196_v39 = vadd.f32 %v195_v36, %v146_v30  ;;  %v150_v47 = vadd.f32 %v142_v41, %v94_v37 }
  0x33   :  { %v151_v49 = vadd.f32 %v143_v38, %v95_v11 }
  0x34   :  { %v197_v46 = vadd.f32 %v196_v39, %v147_v34 }
  0x36   :  { %v198_v48 = vadd.f32 %v197_v46, %v148_v43 }
  0x38   :  { %v199_v40 = vadd.f32 %v198_v48, %v149_v44 }
  0x3a   :  { %v200_v50 = vadd.f32 %v199_v40, %v150_v47 }
  0x3c   :  { %v201_v12 = vadd.f32 %v200_v50, %v151_v49 }
  0x3e   :  { %202 = vadd.xlane.f32.xlu0 %v201_v12 }
  0xc7   :  { %v203_v42 = vpop.xlane.xlu0 %202 }
  0xc8   :  { %v204_v45 = vrot.slane %v203_v42, 4 }
  0xca   :  { %v205_v51 = vadd.f32 %v204_v45, %v203_v42 }
  0xcc   :  { %v206_v52 = vrot.slane %v205_v51, 2 }
  0xce   :  { %v207_v13 = vadd.f32 %v206_v52, %v205_v51 }
  0xd0   :  { %v208_v53 = vrot.slane %v207_v13, 1 }
  0xd2   :  { %v209_v54 = vadd.f32 %v208_v53, %v207_v13 }
  0xd4   :  { %237 = vpush %v209_v54 }
 0x105   :  { %s238_s0 = spop %237 }
 0x106   :  { %s211_s1 = smul.f32 0.125, %s238_s0 }
 0x108   :  { %213 = sst [smem:[#allocation8]] %s211_s1 }
 0x109   :  { %221 = dma.smem_to_hbm %s298_s19, 16, %s357_s2, [#allocation5]  }
 0x10a   :  { %294 = dma.done.wait [#allocation5], 16  }
 0x10b   :  { %295 = vsyncadd [#allocation5], 4294967280 }
 0x10c   :  { %225 = sfence }
 0x10d   :  { %226 = vsyncpa [#allocation4], 1 }
 0x10e   :  { %227 = vsyncpa [#allocation7], 1 }
 0x10f   :  { %228 = vsyncpa [#allocation5], 1 }

</bundles_post_ra>
